<compile_context>
chip_gen: v5e
topology: v5e:2x2
jax: 0.10.0
libtpu: 0.0.40
codegen_flags: <defaults>
</compile_context>

<pallas_src>
import functools

import jax
import jax.numpy as jnp
from jax.experimental import pallas as pl
from jax.experimental.pallas import tpu as pltpu

_EPS = 1e-5


def _round_up(x, m):
    return (x + m - 1) // m * m


def _cdiv(a, b):
    return -(-a // b)


def _vmem_capacity_bytes():
    """Best-effort per-core VMEM query; falls back to the smallest part (v7x)."""
    try:
        info = pltpu.get_tpu_info()
        for attr in ("vmem_capacity_bytes", "vmem_bytes", "vmem_size_bytes"):
            v = getattr(info, attr, None)
            if v:
                return int(v)
    except Exception:
        pass
    return 64 * 1024 * 1024


# ---------------------------------------------------------------------------
# Pass 1: accumulate BatchNorm batch statistics (per-channel sum, sum-of-sq)
# Grid: (core, pixel_tile).  Each core row of the (2,1,U) outputs is a
# resident accumulator across the inner "arbitrary" pixel axis.
# ---------------------------------------------------------------------------
def _bn_stats_kernel(x_ref, w1_ref, sum_ref, sumsq_ref):
    @pl.when(pl.program_id(1) == 0)
    def _():
        sum_ref[...] = jnp.zeros_like(sum_ref)
        sumsq_ref[...] = jnp.zeros_like(sumsq_ref)

    # x tile is already in the matmul dtype (no per-tile VPU cast).
    y = jnp.dot(x_ref[...], w1_ref[...],
                preferred_element_type=jnp.float32)          # [TP, Up]
    sum_ref[...] += jnp.sum(y, axis=0, keepdims=True).reshape(sum_ref.shape)
    sumsq_ref[...] += jnp.sum(y * y, axis=0, keepdims=True).reshape(sumsq_ref.shape)


# ---------------------------------------------------------------------------
# Pass 2: full forward given the precomputed BN affine (scale / shift)
# ---------------------------------------------------------------------------
def _forward_kernel(u_real, u_pad,
                    x_ref, wcat_ref, bn_scale_ref, bn_shift_ref,
                    w2_ref, b2_ref, ln_g_ref, ln_b_ref, o_ref):
    # One fused MXU pass for both branches that share the LHS: RHS = [w1 | ws].
    yz = jnp.dot(x_ref[...], wcat_ref[...],
                 preferred_element_type=jnp.float32)         # [TP, 2*Up]
    y = yz[:, :u_pad]                                        # nonlinear branch
    s = yz[:, u_pad:]                                        # linear shortcut

    # BatchNorm (batch stats folded into scale/shift) + ReLU.
    y = jnp.maximum(y * bn_scale_ref[...] + bn_shift_ref[...], 0.0)

    # Second 1x1 conv (+ bias).
    y = jnp.dot(y.astype(w2_ref.dtype), w2_ref[...],
                preferred_element_type=jnp.float32) + b2_ref[...]

    # Residual add + LayerNorm over the real channel extent.
    # Correctness relies on padded weight columns / vector lanes being zero,
    # so h's padded lanes are exactly 0 (guaranteed by the wrapper's padding).
    h = y + s
    inv_u = 1.0 / u_real
    mu = jnp.sum(h, axis=-1, keepdims=True) * inv_u
    if u_real == u_pad:
        d = h - mu
    else:
        ch = jax.lax.broadcasted_iota(jnp.int32, (1, u_pad), 1)
        d = (h - mu) * (ch < u_real).astype(jnp.float32)
    var = jnp.sum(d * d, axis=-1, keepdims=True) * inv_u
    hn = (h - mu) * jax.lax.rsqrt(var + _EPS)
    o_ref[...] = (hn * ln_g_ref[...] + ln_b_ref[...]).astype(o_ref.dtype)


# ---------------------------------------------------------------------------
# Wrappers
# ---------------------------------------------------------------------------
def mi1x1_convnet_forward_nhwc(x_nhwc, params, *, tile_p=None,
                               matmul_dtype=jnp.bfloat16,
                               out_dtype=jnp.float32):
    """x_nhwc: [N, H, W, C_in]. Returns [N, H, W, n_units] in out_dtype."""
    N, H, W, C_in = x_nhwc.shape
    U = params["w1"].shape[1]
    P = N * H * W

    u_pad = _round_up(max(U, 1), 128)
    mm_bytes = jnp.dtype(matmul_dtype).itemsize
    out_bytes = jnp.dtype(out_dtype).itemsize

    # ---- generation-aware tile / VMEM budgets -------------------------------
    vmem_cap = _vmem_capacity_bytes()
    if vmem_cap >= 96 * 1024 * 1024:          # v5e / v6e: 128 MiB VMEM
        vmem_limit = 96 * 1024 * 1024
        tile_budget = 20 * 1024 * 1024
    else:                                      # v7x: 64 MiB per TensorCore
        vmem_limit = 44 * 1024 * 1024
        tile_budget = 8 * 1024 * 1024

    # Resident (constant index_map) operands, conservatively double-buffered.
    resident = 2 * (C_in * 2 * u_pad + u_pad * u_pad) * mm_bytes + 8 * 4 * u_pad
    # Per-row cost of a pixel tile: streamed x + streamed output (both double
    # buffered) plus the pass-2 f32 intermediates (yz [*,2*Up] + ~5 Up temps).
    per_row = (2 * C_in * mm_bytes + 2 * u_pad * out_bytes
               + 4 * 2 * u_pad + 5 * 4 * u_pad)
    if tile_p is None:
        tile_p = (tile_budget - resident) // max(per_row, 1)
        tile_p = max(256, min(4096, int(tile_p)))
    tile_p = max(16, (int(tile_p) // 16) * 16)      # 16: bf16 sublane packing
    # No point making tiles bigger than half the data (pass 1 is split 2-way).
    tile_p = min(tile_p, max(16, _round_up(_cdiv(P, 2), 16)))

    n_half = _cdiv(P, 2 * tile_p)     # pixel tiles per core row in pass 1
    n_tiles = 2 * n_half
    p_pad = n_tiles * tile_p

    # ---- stream x in the matmul dtype; pad only the pixel axis --------------
    x_flat = x_nhwc.reshape(P, C_in)
    if x_flat.dtype != matmul_dtype:
        x_flat = x_flat.astype(matmul_dtype)
    if p_pad != P:
        x_flat = jnp.pad(x_flat, ((0, p_pad - P), (0, 0)))   # zero rows: inert

    def pad_cols(a, cols):
        return jnp.pad(a, ((0, 0), (0, cols - a.shape[1])))

    # Padded columns/lanes are zero-filled (required invariant, see kernel).
    w1p = pad_cols(params["w1"], u_pad).astype(matmul_dtype)       # [Cin, Up]
    wsp = pad_cols(params["ws"], u_pad).astype(matmul_dtype)       # [Cin, Up]
    wcat = jnp.concatenate([w1p, wsp], axis=1)                     # [Cin, 2Up]
    w2p = jnp.pad(params["w2"],
                  ((0, u_pad - U), (0, u_pad - U))).astype(matmul_dtype)
    b2p = pad_cols(params["b2"], u_pad).astype(jnp.float32)
    bng = pad_cols(params["bn_gamma"], u_pad).astype(jnp.float32)
    bnb = pad_cols(params["bn_beta"], u_pad).astype(jnp.float32)
    lng = pad_cols(params["ln_gamma"], u_pad).astype(jnp.float32)
    lnb = pad_cols(params["ln_beta"], u_pad).astype(jnp.float32)

    # ---- pass 1: BatchNorm batch statistics over all N*H*W pixels ----------
    bn_sum, bn_sumsq = pl.pallas_call(
        _bn_stats_kernel,
        out_shape=(jax.ShapeDtypeStruct((2, 1, u_pad), jnp.float32),
                   jax.ShapeDtypeStruct((2, 1, u_pad), jnp.float32)),
        grid=(2, n_half),
        in_specs=[
            pl.BlockSpec((tile_p, C_in), lambda c, i: (c * n_half + i, 0)),
            pl.BlockSpec((C_in, u_pad), lambda c, i: (0, 0)),   # w1 (resident)
        ],
        out_specs=(
            pl.BlockSpec((1, 1, u_pad), lambda c, i: (c, 0, 0)),
            pl.BlockSpec((1, 1, u_pad), lambda c, i: (c, 0, 0)),
        ),
        compiler_params=pltpu.CompilerParams(
            dimension_semantics=("parallel", "arbitrary"),
            vmem_limit_bytes=vmem_limit),
    )(x_flat, w1p)

    # Fold batch stats + gamma/beta into a single per-channel affine.
    # NOTE: E[y^2]-E[y]^2 in f32; use matmul_dtype=float32 if exact parity
    # with the PyTorch reference matters for very large, non-centered P.
    inv_count = 1.0 / float(P)
    mean = jnp.sum(bn_sum, axis=0) * inv_count                 # (1, Up)
    var = jnp.maximum(jnp.sum(bn_sumsq, axis=0) * inv_count - mean * mean, 0.0)
    bn_scale = bng * jax.lax.rsqrt(var + _EPS)
    bn_shift = bnb - mean * bn_scale

    # ---- pass 2: fused forward ----------------------------------------------
    out_padded = pl.pallas_call(
        functools.partial(_forward_kernel, U, u_pad),
        out_shape=jax.ShapeDtypeStruct((p_pad, u_pad), out_dtype),
        grid=(n_tiles,),
        in_specs=[
            pl.BlockSpec((tile_p, C_in), lambda i: (i, 0)),      # x tile
            pl.BlockSpec((C_in, 2 * u_pad), lambda i: (0, 0)),   # [w1 | ws]
            pl.BlockSpec((1, u_pad), lambda i: (0, 0)),          # bn_scale
            pl.BlockSpec((1, u_pad), lambda i: (0, 0)),          # bn_shift
            pl.BlockSpec((u_pad, u_pad), lambda i: (0, 0)),      # w2
            pl.BlockSpec((1, u_pad), lambda i: (0, 0)),          # b2
            pl.BlockSpec((1, u_pad), lambda i: (0, 0)),          # ln_gamma
            pl.BlockSpec((1, u_pad), lambda i: (0, 0)),          # ln_beta
        ],
        out_specs=pl.BlockSpec((tile_p, u_pad), lambda i: (i, 0)),
        compiler_params=pltpu.CompilerParams(
            dimension_semantics=("parallel",),                   # v7x: 2 TCs
            vmem_limit_bytes=vmem_limit),
    )(x_flat, wcat, bn_scale, bn_shift, w2p, b2p, lng, lnb)

    if p_pad != P or u_pad != U:
        out_padded = out_padded[:P, :U]
    return out_padded.reshape(N, H, W, U)


def mi1x1_convnet_forward(x_nchw, params, **kw):
    """NCHW wrapper matching the PyTorch module interface.

    Prefer mi1x1_convnet_forward_nhwc to avoid the two full-tensor transposes
    (each is an extra HBM read+write of the whole activation)."""
    x_nhwc = jnp.transpose(x_nchw, (0, 2, 3, 1))
    out = mi1x1_convnet_forward_nhwc(x_nhwc, params, **kw)
    return jnp.transpose(out, (0, 3, 1, 2))


# ---------------------------------------------------------------------------
# Parameter construction mirroring the PyTorch module's init
# ---------------------------------------------------------------------------
def init_params(key, n_input, n_units):
    k1, k2, k3, k4 = jax.random.split(key, 4)
    # conv weights stored as [in, out] (PyTorch Conv2d weight is [out, in, 1, 1])
    w1 = jax.random.normal(k1, (n_input, n_units), jnp.float32) * 0.1
    w2 = jax.random.normal(k2, (n_units, n_units), jnp.float32) * 0.1
    b2 = jax.random.normal(k3, (1, n_units), jnp.float32) * 0.1

    # linear_shortcut: uniform(-0.01, 0.01), identity positions set to 1.0
    ws = jax.random.uniform(k4, (n_input, n_units), jnp.float32,
                            minval=-0.01, maxval=0.01)
    if n_units >= n_input:
        eye = jnp.eye(n_input, n_units, dtype=jnp.float32)
        ws = jnp.where(eye > 0, 1.0, ws)

    return {
        "w1": w1,
        "bn_gamma": jnp.ones((1, n_units), jnp.float32),
        "bn_beta": jnp.zeros((1, n_units), jnp.float32),
        "w2": w2,
        "b2": b2,
        "ws": ws,
        "ln_gamma": jnp.ones((1, n_units), jnp.float32),
        "ln_beta": jnp.zeros((1, n_units), jnp.float32),
    }


# ---------------------------------------------------------------------------
# Pure-JAX reference (f32) for correctness checking
# ---------------------------------------------------------------------------
def _reference_forward(x_nchw, params):
    N, C, H, W = x_nchw.shape
    U = params["w1"].shape[1]
    x = jnp.transpose(x_nchw, (0, 2, 3, 1)).reshape(-1, C).astype(jnp.float32)
    y = x @ params["w1"]
    mean = jnp.mean(y, axis=0, keepdims=True)
    var = jnp.mean((y - mean) ** 2, axis=0, keepdims=True)
    y = (y - mean) * jax.lax.rsqrt(var + _EPS)
    y = y * params["bn_gamma"] + params["bn_beta"]
    y = jnp.maximum(y, 0.0)
    y = y @ params["w2"] + params["b2"]
    s = x @ params["ws"]
    h = y + s
    mu = jnp.mean(h, axis=-1, keepdims=True)
    v = jnp.mean((h - mu) ** 2, axis=-1, keepdims=True)
    h = (h - mu) * jax.lax.rsqrt(v + _EPS)
    h = h * params["ln_gamma"] + params["ln_beta"]
    return jnp.transpose(h.reshape(N, H, W, U), (0, 3, 1, 2))


if __name__ == "__main__":
    key = jax.random.PRNGKey(0)
    kx, kp = jax.random.split(key)

    N, C_in, H, W = 2, 4, 16, 16
    n_units = 32

    x = jax.random.normal(kx, (N, C_in, H, W), jnp.float32)
    params = init_params(kp, C_in, n_units)

    ref = _reference_forward(x, params)

    # Full-precision matmul path with a small tile: exercises the multi-tile /
    # two-core-row BN accumulation and the padded / fused pass-2 structure.
    out_f32 = mi1x1_convnet_forward(x, params, tile_p=128,
                                    matmul_dtype=jnp.float32)
    jax.block_until_ready(out_f32)
    assert out_f32.shape == (N, n_units, H, W)
    assert float(jnp.max(jnp.abs(out_f32 - ref))) < 3e-2

    # Default fast path (bf16 streamed x / matmul inputs, f32 accumulation and
    # BN/LN math, auto-sized tiles).
    out = mi1x1_convnet_forward(x, params)
    jax.block_until_ready(out)
    assert out.shape == (N, n_units, H, W)
    assert bool(jnp.all(jnp.isfinite(out)))
    assert float(jnp.max(jnp.abs(out - ref))) < 3e-1

    print("KERNEL_OK")
</pallas_src>

<mosaic_0001>
module attributes {stable_mosaic.version = 11 : i64} {
  func.func @_bn_stats_kernel(%arg0: i32, %arg1: i32, %arg2: memref<128x4xf32, #tpu.memory_space<vmem>>, %arg3: memref<4x128xf32, #tpu.memory_space<vmem>>, %arg4: memref<1x1x128xf32, #tpu.memory_space<vmem>>, %arg5: memref<1x1x128xf32, #tpu.memory_space<vmem>>) attributes {dimension_semantics = [#tpu.dimension_semantics<parallel>, #tpu.dimension_semantics<arbitrary>], iteration_bounds = array<i64: 2, 2>, scalar_prefetch = 0 : i64, scratch_operands = 0 : i64, tpu.core_type = #tpu.core_type<tc>, window_params = [{transform_indices = @transform_0, window_bounds = array<i64: 128, 4>}, {pipeline_mode = #tpu.pipeline_mode<synchronous>, transform_indices = @transform_1, window_bounds = array<i64: 4, 128>}, {transform_indices = @transform_2, window_bounds = array<i64: 1, 1, 128>}, {transform_indices = @transform_3, window_bounds = array<i64: 1, 1, 128>}]} {
    %c0_i32 = arith.constant 0 : i32
    %0 = arith.cmpi eq, %arg1, %c0_i32 : i32
    %1 = arith.extui %0 : i1 to i32
    %c0_i32_0 = arith.constant 0 : i32
    %2 = arith.cmpi ne, %1, %c0_i32_0 : i32
    scf.if %2 {
      %cst_18 = arith.constant 0.000000e+00 : f32
      %19 = vector.broadcast %cst_18 : f32 to vector<1x1x128xf32>
      %c0_19 = arith.constant 0 : index
      %c0_20 = arith.constant 0 : index
      %c0_21 = arith.constant 0 : index
      %20 = vector.load %arg4[%c0_19, %c0_20, %c0_21] : memref<1x1x128xf32, #tpu.memory_space<vmem>>, vector<1x1x128xf32>
      tpu.vector_store %arg4[%c0_19, %c0_20, %c0_21], %19 {strides = array<i32>} : memref<1x1x128xf32, #tpu.memory_space<vmem>>, vector<1x1x128xf32>,
      %cst_22 = arith.constant 0.000000e+00 : f32
      %21 = vector.broadcast %cst_22 : f32 to vector<1x1x128xf32>
      %c0_23 = arith.constant 0 : index
      %c0_24 = arith.constant 0 : index
      %c0_25 = arith.constant 0 : index
      %22 = vector.load %arg5[%c0_23, %c0_24, %c0_25] : memref<1x1x128xf32, #tpu.memory_space<vmem>>, vector<1x1x128xf32>
      tpu.vector_store %arg5[%c0_23, %c0_24, %c0_25], %21 {strides = array<i32>} : memref<1x1x128xf32, #tpu.memory_space<vmem>>, vector<1x1x128xf32>,
    } else {
    }
    %c0 = arith.constant 0 : index
    %c0_1 = arith.constant 0 : index
    %3 = vector.load %arg2[%c0, %c0_1] : memref<128x4xf32, #tpu.memory_space<vmem>>, vector<128x4xf32>
    %c0_2 = arith.constant 0 : index
    %c0_3 = arith.constant 0 : index
    %4 = vector.load %arg3[%c0_2, %c0_3] : memref<4x128xf32, #tpu.memory_space<vmem>>, vector<4x128xf32>
    %cst = arith.constant dense<0.000000e+00> : vector<128x128xf32>
    %5 = tpu.matmul %3, %4, %cst {dimension_numbers = #tpu.dot_dimension_numbers<[1], [0], [0], [1], [0, 0, 1, 1], [], []>} : vector<128x4xf32>, vector<4x128xf32>, vector<128x128xf32> -> vector<128x128xf32>
    %c0_4 = arith.constant 0 : index
    %c0_5 = arith.constant 0 : index
    %c0_6 = arith.constant 0 : index
    %6 = vector.load %arg4[%c0_4, %c0_5, %c0_6] : memref<1x1x128xf32, #tpu.memory_space<vmem>>, vector<1x1x128xf32>
    %cst_7 = arith.constant dense<0.000000e+00> : vector<128xf32>
    %7 = vector.multi_reduction <add>, %5, %cst_7 [0] : vector<128x128xf32> to vector<128xf32>
    %8 = vector.shape_cast %7 : vector<128xf32> to vector<1x128xf32>
    %9 = vector.shape_cast %8 : vector<1x128xf32> to vector<1x1x128xf32>
    %10 = arith.addf %6, %9 : vector<1x1x128xf32>
    %c0_8 = arith.constant 0 : index
    %c0_9 = arith.constant 0 : index
    %c0_10 = arith.constant 0 : index
    %11 = vector.load %arg4[%c0_8, %c0_9, %c0_10] : memref<1x1x128xf32, #tpu.memory_space<vmem>>, vector<1x1x128xf32>
    tpu.vector_store %arg4[%c0_8, %c0_9, %c0_10], %10 {strides = array<i32>} : memref<1x1x128xf32, #tpu.memory_space<vmem>>, vector<1x1x128xf32>,
    %c0_11 = arith.constant 0 : index
    %c0_12 = arith.constant 0 : index
    %c0_13 = arith.constant 0 : index
    %12 = vector.load %arg5[%c0_11, %c0_12, %c0_13] : memref<1x1x128xf32, #tpu.memory_space<vmem>>, vector<1x1x128xf32>
    %13 = arith.mulf %5, %5 : vector<128x128xf32>
    %cst_14 = arith.constant dense<0.000000e+00> : vector<128xf32>
    %14 = vector.multi_reduction <add>, %13, %cst_14 [0] : vector<128x128xf32> to vector<128xf32>
    %15 = vector.shape_cast %14 : vector<128xf32> to vector<1x128xf32>
    %16 = vector.shape_cast %15 : vector<1x128xf32> to vector<1x1x128xf32>
    %17 = arith.addf %12, %16 : vector<1x1x128xf32>
    %c0_15 = arith.constant 0 : index
    %c0_16 = arith.constant 0 : index
    %c0_17 = arith.constant 0 : index
    %18 = vector.load %arg5[%c0_15, %c0_16, %c0_17] : memref<1x1x128xf32, #tpu.memory_space<vmem>>, vector<1x1x128xf32>
    tpu.vector_store %arg5[%c0_15, %c0_16, %c0_17], %17 {strides = array<i32>} : memref<1x1x128xf32, #tpu.memory_space<vmem>>, vector<1x1x128xf32>,
    return
  }
  func.func @transform_0(%arg0: i32, %arg1: i32) -> (i32, i32) {
    %c2_i32 = arith.constant 2 : i32
    %0 = arith.muli %arg0, %c2_i32 : i32
    %1 = arith.addi %0, %arg1 : i32
    %c0_i32 = arith.constant 0 : i32
    %c0_i32_0 = arith.constant 0 : i32
    return %1, %c0_i32 : i32, i32
  }
  func.func @transform_1(%arg0: i32, %arg1: i32) -> (i32, i32) {
    %c0_i32 = arith.constant 0 : i32
    %c0_i32_0 = arith.constant 0 : i32
    %c0_i32_1 = arith.constant 0 : i32
    return %c0_i32, %c0_i32_0 : i32, i32
  }
  func.func @transform_2(%arg0: i32, %arg1: i32) -> (i32, i32, i32) {
    %c0_i32 = arith.constant 0 : i32
    %c0_i32_0 = arith.constant 0 : i32
    %c0_i32_1 = arith.constant 0 : i32
    return %arg0, %c0_i32, %c0_i32_0 : i32, i32, i32
  }
  func.func @transform_3(%arg0: i32, %arg1: i32) -> (i32, i32, i32) {
    %c0_i32 = arith.constant 0 : i32
    %c0_i32_0 = arith.constant 0 : i32
    %c0_i32_1 = arith.constant 0 : i32
    return %arg0, %c0_i32, %c0_i32_0 : i32, i32, i32
  }
}

</mosaic_0001>

<bundles_post_ra>
// kernel: tpu_custom_call.1
= control target key start
LH: loop header
LB: loop body
LE: loop exit
PB: predicated region body
PF: predicated region fallthrough
CT: control target
= control target key end

     0   :  { %9 = vsyncpa [#allocation3], 0  ;;  %s994_s0 = inlined_call_operand.vmem [shape: f32[512,4], index: 0, kind: input, shape index: {}]   ;;  %s995_s1 = inlined_call_operand.vmem [shape: f32[4,128], index: 1, kind: input, shape index: {}]   ;;  %s996_s2 = inlined_call_operand.hbm [shape: f32[2,1,128], index: 2, kind: output, shape index: {0}]   ;;  %s997_s3 = inlined_call_operand.hbm [shape: f32[2,1,128], index: 3, kind: output, shape index: {1}]  }
   0x1   :  { %11 = vsyncpa [#allocation3 + $0x1], 0 }
   0x2   :  { %12 = vsyncpa [#allocation5], 0 }
   0x3   :  { %14 = vsyncpa [#allocation5 + $0x1], 0  ;;  %s794_s12 = smov 0   ;;  %s796_s13 = smov 0  }
   0x4   :  { %s798_s14 = smov 0   ;;  %s800_s15 = smov 0  }
   0x5   :  { %s802_s16 = smov 0   ;;  %s804_s17 = smov 0  }
   0x6   :  { %s806_s18 = smov 0   ;;  %s808_s19 = smov 0  }
   0x7 LB: > { %s535_s20 = sadd.s32 4294967295, %s771_s19   ;;  %s536_s21 = sadd.s32 4294967294, %s771_s19   ;;  %s771_s19 = sphi %s808_s19, %s20_s19   ;;  %s767_s18 = sphi %s806_s18, %s1006_s18   ;;  %s763_s17 = sphi %s804_s17, %s1005_s17   ;;  %s759_s16 = sphi %s802_s16, %s1004_s16   ;;  %s755_s15 = sphi %s800_s15, %s1003_s15   ;;  %s751_s14 = sphi %s798_s14, %s1002_s14   ;;  %s747_s13 = sphi %s796_s13, %s1001_s13   ;;  %s743_s12 = sphi %s794_s12, %s1000_s12  }
   0x8   : > { %s29_s22 = sadd.s32 1, %s763_s17  ;;  %s32_s23 = sadd.s32 1, %s767_s18 }
   0x9   : > { %p30_p0 = scmp.ge.s32.totalorder %s29_s22, 2  ;;  %p100_p1 = scmp.ne.s32.totalorder %s751_s14, %s747_s13 }
   0xa   : > { %p101_p2 = scmp.eq.s32.totalorder %s535_s20, 3  ;;  %p106_p4 = scmp.ne.s32.totalorder %s747_s13, %s743_s12 }
   0xb   : > { %s1008_s22 = smov (%p30_p0, %s29_s22), 0  ;;  %s1010_s23 = smov (!%p30_p0, %s32_s23), %s767_s18 }
   0xc   : > { %p843_p3 = por %p101_p2, %p100_p1  ;;  %p34_p5 = scmp.ge.s32.totalorder %s1010_s23, 2 }
   0xd   : > { %p107_p6 = scmp.eq.s32.totalorder %s536_s21, 3  ;;  %p541_p7 = scmp.ge.s32.totalorder %s771_s19, 1 }
   0xe   : > { %p167_p8 = scmp.lt.s32.totalorder %s771_s19, 5  ;;  %s1012_s23 = smov (%p34_p5, %s1010_s23), 0 }
   0xf   : > { %p853_p9 = por %p107_p6, %p106_p4  ;;  %s87_s26 = ssub.s32 %s767_s18, %s1012_s23 }
  0x10   : > { %p168_p10 = pnand %p541_p7, %p167_p8  ;;  %s90_s27 = sadd.s32 1, %s751_s14 }
  0x11   : > { %p88_p11 = scmp.eq.s32.totalorder %s87_s26, 0  ;;  %s864_s29 = sand.u32 (!%p168_p10), 1, %s747_s13  }
  0x12   : > { %171 = sbr.rel (%p168_p10) target bundleno = 239 (0xef), region = 28  ;;  %s542_s30 = sshll.u32 (!%p168_p10), %s759_s16, 1 }
  0x13   : > { %s861_s28 = scalar_select %p88_p11, %s751_s14, %s90_s27  }
  0x14   : > { %s197_s4 = sadd.s32 (!%p168_p10), %s755_s15, %s542_s30  ;;  %s874_s10 = scalar_lea.vmem (!%p168_p10), [#allocation2], %s864_s29 }
  0x15   : > { %s543_s5 = sshll.u32 (!%p168_p10), %s197_s4, 4  ;;  %s877_s11 = scalar_lea.vmem (!%p168_p10), [#allocation4], %s864_s29 }
  0x16   : > { %p199_p12 = scmp.lt.s32.totalorder (!%p168_p10), %s543_s5, 63  ;;  %p545_p13 = scmp.ne.s32.totalorder (!%p168_p10), %s755_s15, 0 }
  0x18   : > { %s1014_s5 = smov (!%p199_p12, %s543_s5), 63  ;;  %209 = sbr.rel (%p545_p13) target bundleno = 32 (0x20), region = 32 }
  0x19   : > { %s544_s6 = sshll.u32 %s1014_s5, 3 }
  0x1a   : > { %s871_s9 = scalar_lea.vmem %s994_s0, %s544_s6 }
  0x1d   : > { %v773_v0 = vmov 0.0  }
  0x1e   : > { %210 = vst [vmem:[%s874_s10] sm:$0x1] %v773_v0 }
  0x1f   : > { %211 = vst [vmem:[%s877_s11] sm:$0x1] %v773_v0 }
  0x20 PF: > { %v228_v1 = vld [vmem:[%s995_s1] sm:$0xf]  ;;  %vm278_vm0 = vcmask 1043456   ;;  %vm229_vm1 = vcmask 31744   ;;  %v213_v6 = vld [vmem:[%s871_s9 + $0x8] sm:$0xff]  ;;  %v214_v10 = vld [vmem:[%s871_s9 + $0x10] sm:$0xff]  ;;  %s424_s27 = scalar_lea.hbm %s996_s2, %s759_s16  ;;  %s437_s5 = scalar_lea.hbm %s997_s3, %s759_s16 }
  0x21   : > { %v212_v2 = vld [vmem:[%s871_s9] sm:$0xff]  ;;  %546 = vmatpush.msk.msra.mxu0 %vm278_vm0, %v228_v1  ;;  %565 = vmatpush.msk.msra.mxu1 %vm278_vm0, %v228_v1  ;;  %v217_v7 = vld [vmem:[%s871_s9 + $0x28] sm:$0xff]  ;;  %v218_v11 = vld [vmem:[%s871_s9 + $0x30] sm:$0xff]  ;;  %s426_s6 = sshll.u32 %s874_s10, 4  ;;  %s927_s7 = sshll.u32 %s424_s27, 4  ;;  %s427_s6 = int_to_ptr.vmem [resolvable:$true] %s426_s6  ;;  %s429_s7 = int_to_ptr.hbm [resolvable:$true] %s927_s7 }
  0x22   : > { %v216_v3 = vld [vmem:[%s871_s9 + $0x20] sm:$0xff]  ;;  %547 = vmatmul.msk.f32.vlgmr.msra.gmra.mxu0 %vm229_vm1, %v212_v2  ;;  %566 = vmatpush.msk.msra.mxu2 %vm278_vm0, %v228_v1  ;;  %v221_v8 = vld [vmem:[%s871_s9 + $0x48] sm:$0xff]  ;;  %v222_v12 = vld [vmem:[%s871_s9 + $0x50] sm:$0xff]  ;;  %s439_s8 = sshll.u32 %s877_s11, 4  ;;  %s412_s16 = scalar_lea.sflag [#allocation3], %s864_s29  ;;  %s935_s8 = int_to_ptr.vmem [resolvable:$true] %s439_s8 }
  0x23   : > { %v220_v4 = vld [vmem:[%s871_s9 + $0x40] sm:$0xff]  ;;  %551 = vmatmul.msk.f32.vlgmr.msra.gmra.mxu1 %vm229_vm1, %v216_v3  ;;  %567 = vmatpush.msk.msra.mxu3 %vm278_vm0, %v228_v1  ;;  %v225_v9 = vld [vmem:[%s871_s9 + $0x68] sm:$0xff]  ;;  %v226_v13 = vld [vmem:[%s871_s9 + $0x70] sm:$0xff]  ;;  %s659_s20 = sshra.s32 %s429_s7, 4  ;;  %s665_s27 = scalar_lea.hbm %s996_s2, 2  ;;  %s660_s20 = int_to_ptr.hbm [resolvable:$true] %s659_s20 }
  0x24   : > { %v224_v5 = vld [vmem:[%s871_s9 + $0x60] sm:$0xff]  ;;  %555 = vmatmul.msk.f32.vlgmr.msra.gmra.mxu2 %vm229_vm1, %v220_v4  ;;  %v215_v14 = vld [vmem:[%s871_s9 + $0x18] sm:$0xff]  ;;  %s661_s21 = scalar_lea.hbm %s660_s20, 1  ;;  %p666_p4 = scmp.lt.s32.totalorder %s660_s20, %s996_s2 }
  0x25   : > { %559 = vmatmul.msk.f32.vlgmr.msra.gmra.mxu3 %vm229_vm1, %v224_v5  ;;  %v219_v15 = vld [vmem:[%s871_s9 + $0x38] sm:$0xff]  ;;  %p662_p0 = scmp.ne.s32.totalorder %s660_s20, %s661_s21  ;;  %p667_p5 = scmp.lt.s32.totalorder %s665_s27, %s661_s21 }
  0x26   : > { %v223_v16 = vld [vmem:[%s871_s9 + $0x58] sm:$0xff] }
  0x27   : > { %v227_v17 = vld [vmem:[%s871_s9 + $0x78] sm:$0xff]  ;;  %s931_s9 = sshll.u32 %s437_s5, 4  ;;  %p663_p1 = pnand %p662_p0, %p843_p3  ;;  %s442_s9 = int_to_ptr.hbm [resolvable:$true] %s931_s9 }
  0x28   : > { %p668_p6 = por %p667_p5, %p666_p4 }
  0x29   : > { %p664_p2 = pneg %p663_p1 }
  0x2a   : > { %548 = vmatmul.msk.f32.gmra.mxu0 %vm229_vm1, %v213_v6 }
  0x2b   : > { %552 = vmatmul.msk.f32.gmra.mxu1 %vm229_vm1, %v217_v7  ;;  %p669_p7 = pnand %p668_p6, %p664_p2 }
  0x2c   : > { %556 = vmatmul.msk.f32.gmra.mxu2 %vm229_vm1, %v221_v8 }
  0x2d   : > { %560 = vmatmul.msk.f32.gmra.mxu3 %vm229_vm1, %v225_v9 }
  0x32   : > { %549 = vmatmul.msk.f32.gmra.mxu0 %vm229_vm1, %v214_v10 }
  0x33   : > { %553 = vmatmul.msk.f32.gmra.mxu1 %vm229_vm1, %v218_v11 }
  0x34   : > { %557 = vmatmul.msk.f32.gmra.mxu2 %vm229_vm1, %v222_v12 }
  0x35   : > { %561 = vmatmul.msk.f32.gmra.mxu3 %vm229_vm1, %v226_v13 }
  0x3a   : > { %550 = vmatmul.msk.f32.gmra.mxu0 %vm229_vm1, %v215_v14 }
  0x3b   : > { %554 = vmatmul.msk.f32.gmra.mxu1 %vm229_vm1, %v219_v15 }
  0x3c   : > { %558 = vmatmul.msk.f32.gmra.mxu2 %vm229_vm1, %v223_v16 }
  0x3d   : > { %562 = vmatmul.msk.f32.gmra.mxu3 %vm229_vm1, %v227_v17 }
  0x9f   : > { %v299_v18 = vpop.f32.mrf.mxu0 }
  0xa0   : > { %v311_v19 = vpop.f32.mrf.mxu1  ;;  %v372_v28 = vmul.f32 %v299_v18, %v299_v18 }
  0xa1   : > { %v376_v39 = vmul.f32 %v311_v19, %v311_v19 }
  0xa7   : > { %v302_v20 = vpop.f32.mrf.mxu0  ;;  %v323_v22 = vpop.f32.mrf.mxu2 }
  0xa8   : > { %v314_v21 = vpop.f32.mrf.mxu1  ;;  %v335_v23 = vpop.f32.mrf.mxu3  ;;  %v373_v27 = vmul.f32 %v302_v20, %v302_v20  ;;  %v348_v29 = vadd.f32 %v302_v20, %v299_v18  ;;  %v380_v53 = vmul.f32 %v323_v22, %v323_v22 }
  0xa9   : > { %v377_v43 = vmul.f32 %v314_v21, %v314_v21  ;;  %v384_v2 = vmul.f32 %v335_v23, %v335_v23 }
  0xaa   : > { %v388_v31 = vadd.f32 %v373_v27, %v372_v28  ;;  %v371_v28 = vld [vmem:[%s877_s11] sm:$0x1] }
  0xaf   : > { %v305_v24 = vpop.f32.mrf.mxu0  ;;  %v326_v25 = vpop.f32.mrf.mxu2 }
  0xb0   : > { %v317_v26 = vpop.f32.mrf.mxu1  ;;  %v374_v30 = vmul.f32 %v305_v24, %v305_v24  ;;  %v349_v32 = vadd.f32 %v348_v29, %v305_v24  ;;  %v338_v34 = vpop.f32.mrf.mxu3  ;;  %v381_v57 = vmul.f32 %v326_v25, %v326_v25 }
  0xb1   : > { %v378_v47 = vmul.f32 %v317_v26, %v317_v26  ;;  %v385_v6 = vmul.f32 %v338_v34, %v338_v34 }
  0xb2   : > { %v389_v35 = vadd.f32 %v388_v31, %v374_v30 }
  0xb7   : > { %v308_v33 = vpop.f32.mrf.mxu0  ;;  %v329_v38 = vpop.f32.mrf.mxu2 }
  0xb8   : > { %v350_v36 = vadd.f32 %v349_v32, %v308_v33  ;;  %v375_v37 = vmul.f32 %v308_v33, %v308_v33  ;;  %v320_v42 = vpop.f32.mrf.mxu1  ;;  %v341_v52 = vpop.f32.mrf.mxu3  ;;  %v382_v61 = vmul.f32 %v329_v38, %v329_v38 }
  0xb9   : > { %v379_v49 = vmul.f32 %v320_v42, %v320_v42  ;;  %v386_v10 = vmul.f32 %v341_v52, %v341_v52 }
  0xba   : > { %v351_v40 = vadd.f32 %v350_v36, %v311_v19  ;;  %v390_v41 = vadd.f32 %v389_v35, %v375_v37 }
  0xbc   : > { %v391_v44 = vadd.f32 %v390_v41, %v376_v39  ;;  %v352_v45 = vadd.f32 %v351_v40, %v314_v21 }
  0xbe   : > { %v353_v46 = vadd.f32 %v352_v45, %v317_v26  ;;  %v392_v48 = vadd.f32 %v391_v44, %v377_v43 }
  0xbf   : > { %v332_v56 = vpop.f32.mrf.mxu2 }
  0xc0   : > { %v393_v50 = vadd.f32 %v392_v48, %v378_v47  ;;  %v354_v51 = vadd.f32 %v353_v46, %v320_v42  ;;  %v383_v63 = vmul.f32 %v332_v56, %v332_v56  ;;  %v344_v5 = vpop.f32.mrf.mxu3 }
  0xc1   : > { %v387_v12 = vmul.f32 %v344_v5, %v344_v5 }
  0xc2   : > { %v355_v54 = vadd.f32 %v354_v51, %v323_v22  ;;  %v394_v55 = vadd.f32 %v393_v50, %v379_v49 }
  0xc4   : > { %v395_v58 = vadd.f32 %v394_v55, %v380_v53  ;;  %v356_v59 = vadd.f32 %v355_v54, %v326_v25  ;;  %v347_v25 = vld [vmem:[%s874_s10] sm:$0x1] }
  0xc6   : > { %v357_v60 = vadd.f32 %v356_v59, %v329_v38  ;;  %v396_v62 = vadd.f32 %v395_v58, %v381_v57 }
  0xc8   : > { %v397_v0 = vadd.f32 %v396_v62, %v382_v61  ;;  %v358_v1 = vadd.f32 %v357_v60, %v332_v56 }
  0xca   : > { %v359_v3 = vadd.f32 %v358_v1, %v335_v23  ;;  %v398_v4 = vadd.f32 %v397_v0, %v383_v63 }
  0xcc   : > { %v399_v7 = vadd.f32 %v398_v4, %v384_v2  ;;  %v360_v8 = vadd.f32 %v359_v3, %v338_v34 }
  0xce   : > { %v361_v9 = vadd.f32 %v360_v8, %v341_v52  ;;  %v400_v11 = vadd.f32 %v399_v7, %v385_v6 }
  0xd0   : > { %v401_v13 = vadd.f32 %v400_v11, %v386_v10  ;;  %v362_v14 = vadd.f32 %v361_v9, %v344_v5 }
  0xd2   : > { %v363_v15 = vrot.slane %v362_v14, 4  ;;  %v402_v16 = vadd.f32 %v401_v13, %v387_v12 }
  0xd4   : > { %v364_v17 = vadd.f32 %v363_v15, %v362_v14  ;;  %v403_v18 = vrot.slane %v402_v16, 4 }
  0xd6   : > { %v365_v19 = vrot.slane %v364_v17, 2  ;;  %v404_v20 = vadd.f32 %v403_v18, %v402_v16 }
  0xd8   : > { %v366_v21 = vadd.f32 %v365_v19, %v364_v17  ;;  %v405_v22 = vrot.slane %v404_v20, 2 }
  0xda   : > { %v367_v23 = vrot.slane %v366_v21, 1  ;;  %v406_v24 = vadd.f32 %v405_v22, %v404_v20 }
  0xdc   : > { %v368_v26 = vadd.f32 %v367_v23, %v366_v21  ;;  %v407_v27 = vrot.slane %v406_v24, 1 }
  0xde   : > { %v369_v29 = vadd.f32 %v368_v26, %v347_v25  ;;  %v408_v30 = vadd.f32 %v407_v27, %v406_v24 }
  0xe0   : > { %370 = vst [vmem:[%s874_s10] sm:$0x1] %v369_v29  ;;  %v409_v31 = vadd.f32 %v408_v30, %v371_v28 }
  0xe1   : > { %672 = shalt.err (!%p669_p7)
}
  0xe2   : > { %568 = dma.vmem_to_hbm [thread:$0]  (%p843_p3), %s427_s6, 16, %s429_s7, %s412_s16   ;;  %410 = vst [vmem:[%s877_s11] sm:$0x1] %v409_v31 }
  0xe3   : > { %s416_s10 = scalar_lea.sflag [#allocation5], %s864_s29  ;;  %s687_s5 = sshra.s32 %s442_s9, 4  ;;  %s688_s5 = int_to_ptr.hbm [resolvable:$true] %s687_s5 }
  0xe4   : > { %s689_s15 = scalar_lea.hbm %s688_s5, 1  ;;  %s693_s26 = scalar_lea.hbm %s997_s3, 2 }
  0xe5   : > { %p690_p8 = scmp.ne.s32.totalorder %s688_s5, %s689_s15  ;;  %p694_p12 = scmp.lt.s32.totalorder %s688_s5, %s997_s3 }
  0xe6   : > { %p695_p13 = scmp.lt.s32.totalorder %s693_s26, %s689_s15 }
  0xe7   : > { %p691_p10 = pnand %p690_p8, %p843_p3 }
  0xe8   : > { %p696_p0 = por %p695_p13, %p694_p12 }
  0xe9   : > { %p692_p11 = pneg %p691_p10 }
  0xeb   : > { %p697_p1 = pnand %p696_p0, %p692_p11 }
  0xed   : > { %700 = shalt.err (!%p697_p1)
}
  0xee   : > { %569 = dma.vmem_to_hbm [thread:$0]  (%p843_p3), %s935_s8, 16, %s442_s9, %s416_s10  }
  0xef PF: > { %p579_p2 = scmp.ge.s32.totalorder %s771_s19, 2  ;;  %s453_s29 = sand.u32 1, %s743_s12  }
  0xf0   : > { %s454_s11 = scalar_lea.sflag [#allocation3], %s453_s29 }
  0xf1   : > { %p573_p4 = pnand %p579_p2, %p853_p9 }
  0xf3   : > { %p574_p5 = pneg %p573_p4 }
  0xf5   : > { %734 = dma.done.wait (%p574_p5), %s454_s11, 16  }
  0xf6   : > { %736 = vsyncadd (%p574_p5), %s454_s11, 4294967280  ;;  %s463_s6 = scalar_lea.sflag [#allocation5], %s453_s29 }
  0xf7   : > { %738 = dma.done.wait (%p574_p5), %s463_s6, 16  }
  0xf8   : > { %740 = vsyncadd (%p574_p5), %s463_s6, 4294967280  ;;  %s20_s19 = sadd.s32 1, %s771_s19   ;;  %s1000_s12 = smov %s747_s13 }
  0xf9   : > { %p17_p6 = scmp.ge.s32.totalorder %s20_s19, 6   ;;  %s1001_s13 = smov %s751_s14 }
  0xfa   : > { %s1002_s14 = smov %s861_s28  ;;  %s1003_s15 = smov %s763_s17 }
  0xfb   : > { %s1004_s16 = smov %s767_s18  ;;  %s1005_s17 = smov %s1008_s22 }
  0xfc   : > { %s1006_s18 = smov %s1012_s23  ;;  %19 = sbr.rel (!%p17_p6) target bundleno = 7 (0x7), region = 84 }
 0x101   :  { %468 = vsyncpa [#allocation3], 1 }
 0x102   :  { %470 = vsyncpa [#allocation3 + $0x1], 1 }
 0x103   :  { %471 = vsyncpa [#allocation5], 1 }
 0x104   :  { %473 = vsyncpa [#allocation5 + $0x1], 1 }

</bundles_post_ra>
